<compile_context>
chip_gen: v7x
topology: tpu7x:2x2x1
jax: 0.10.0
libtpu: 0.0.40
codegen_flags: <defaults>
</compile_context>

<pallas_src>
import functools

import jax
import jax.numpy as jnp
from jax.experimental import pallas as pl
from jax.experimental.pallas import tpu as pltpu


# ----------------------------- tile / VMEM config ---------------------------


def _vmem_limit_bytes():
    """Generation-aware scoped-VMEM budget (≈96 MiB on 128 MiB parts, ≈48 MiB on v7x)."""
    try:
        cap = int(pltpu.get_tpu_info().vmem_capacity_bytes)
        return int(min(cap * 3 // 4, 100 * 1024 * 1024))
    except Exception:
        return 32 * 1024 * 1024  # safe on every generation


def _pick_tile(dim, target, align=128):
    """Largest multiple of `align` that divides `dim` and is <= target (else full dim)."""
    if dim % align != 0 or dim <= align:
        return dim
    t = max(align, min(target, dim) - min(target, dim) % align)
    while dim % t != 0:
        t -= align
    return t


# ----------------------------- Pallas kernel --------------------------------


def _scatter2scatter_kernel(*refs, apply_gate, compute_dtype):
    # refs: (nrb_ref, be_ref, [gate_ref], x_ref, w_ref, o_ref, acc_ref)
    #   nrb_ref: (1,)  SMEM   number of real (non-padding) row tiles
    #   x_ref  : (TM, TK)     rows that all belong to one expert
    #   w_ref  : (TK, TN)     that expert's weight slice (expert dim squeezed)
    #   gate_ref:(TM, 1)      per-row gate (only when apply_gate)
    #   acc_ref: (TM, TN) f32 accumulator scratch (persists across the k axis)
    if apply_gate:
        nrb_ref, _be_ref, g_ref, x_ref, w_ref, o_ref, acc_ref = refs
    else:
        nrb_ref, _be_ref, x_ref, w_ref, o_ref, acc_ref = refs
        g_ref = None

    b = pl.program_id(1)
    kk = pl.program_id(2)
    is_real = b < nrb_ref[0]

    @pl.when(is_real & (kk == 0))
    def _():
        acc_ref[...] = jnp.zeros_like(acc_ref)

    @pl.when(is_real)
    def _():
        x = x_ref[...]
        w = w_ref[...]
        if x.dtype != compute_dtype:
            x = x.astype(compute_dtype)
        if w.dtype != compute_dtype:
            w = w.astype(compute_dtype)  # per-block VPU cast; avoids a wrapper HBM pass
        acc_ref[...] += jnp.dot(x, w, preferred_element_type=jnp.float32)

    @pl.when(is_real & (kk == pl.num_programs(2) - 1))
    def _():
        acc = acc_ref[...]
        if apply_gate:
            acc = acc * g_ref[...].astype(jnp.float32)  # free VPU work under the MXU
        o_ref[...] = acc.astype(o_ref.dtype)


def _grouped_matmul(x_pad, weight, num_real, block_expert, gate_pad, *,
                    tm, tn_target, tk_target, compute_dtype, out_dtype):
    nk_pad, d_in = x_pad.shape
    _, _, d_out = weight.shape
    nb = nk_pad // tm

    vmem_limit = _vmem_limit_bytes()
    wbytes = jnp.dtype(weight.dtype).itemsize

    # Output-feature tile: largest 128-multiple dividing d_out (never full-width slabs).
    tn = _pick_tile(d_out, tn_target)
    # K (d_in) tile: sized so the (tk, tn) weight block stays <= ~1/4 of the VMEM
    # budget (double-buffers comfortably even on v7x).  When the whole d_in fits,
    # n_k == 1 and the weight block is reused across consecutive same-expert row tiles.
    if tk_target is None:
        wblock_budget = max(vmem_limit // 4, 2 * 1024 * 1024)
        tk_target = max(128, wblock_budget // max(tn * wbytes, 1))
    tk = _pick_tile(d_in, tk_target)

    n_j = d_out // tn
    n_k = d_in // tk
    last_k = n_k - 1

    apply_gate = gate_pad is not None
    kernel = functools.partial(
        _scatter2scatter_kernel, apply_gate=apply_gate, compute_dtype=compute_dtype)

    # Padded (zero) row tiles are clamped onto the LAST REAL tile in every index
    # map: their block indices equal the previous grid step's, so no fresh DMA is
    # issued for them and their output block is never written back separately.
    def _row(b, nrb_ref):
        return jnp.where(b < nrb_ref[0], b, nrb_ref[0] - 1)

    def x_map(j, b, k, nrb_ref, be_ref):
        real = b < nrb_ref[0]
        return (jnp.where(real, b, nrb_ref[0] - 1), jnp.where(real, k, last_k))

    def w_map(j, b, k, nrb_ref, be_ref):
        real = b < nrb_ref[0]
        bb = jnp.where(real, b, nrb_ref[0] - 1)
        return (be_ref[bb], jnp.where(real, k, last_k), j)

    def g_map(j, b, k, nrb_ref, be_ref):
        return (_row(b, nrb_ref), 0)

    def o_map(j, b, k, nrb_ref, be_ref):
        return (_row(b, nrb_ref), j)

    in_specs = []
    operands = []
    if apply_gate:
        in_specs.append(pl.BlockSpec((tm, 1), g_map))
        operands.append(gate_pad)
    in_specs.append(pl.BlockSpec((tm, tk), x_map))
    in_specs.append(pl.BlockSpec((None, tk, tn), w_map))  # expert dim squeezed
    operands.extend([x_pad, weight])

    grid_spec = pltpu.PrefetchScalarGridSpec(
        num_scalar_prefetch=2,              # num_real, block_expert
        grid=(n_j, nb, n_k),                # j outer, rows middle, reduction innermost
        in_specs=in_specs,
        out_specs=pl.BlockSpec((tm, tn), o_map),
        scratch_shapes=[pltpu.VMEM((tm, tn), jnp.float32)],
    )
    return pl.pallas_call(
        kernel,
        grid_spec=grid_spec,
        out_shape=jax.ShapeDtypeStruct((nk_pad, d_out), out_dtype),
        compiler_params=pltpu.CompilerParams(
            # j is safe to shard across TensorCores (v7x megacore); the row axis
            # must stay sequential so same-expert weight-block reuse and the
            # padded-tile output clamping remain valid.  k is the reduction.
            dimension_semantics=("parallel", "arbitrary", "arbitrary"),
            vmem_limit_bytes=vmem_limit,
        ),
    )(num_real, block_expert, *operands)


# ------------------------------- forward ------------------------------------


@functools.partial(
    jax.jit,
    static_argnames=("k", "grouped_in", "grouped_out", "tm", "tn", "tk", "compute_dtype"),
)
def expert_linear_forward(
    weight,
    inputs,
    *,
    k,
    sorted_expert_indices,
    sorted_scattered_indices,
    expert_offsets,
    gates=None,
    grouped_in=False,
    grouped_out=False,
    tm=128,          # NOTE: use tm=256 on v6e/v7x for prefill-heavy workloads (256x256 MXU)
    tn=1024,         # target d_out tile (largest 128-multiple dividing d_out is used)
    tk=None,         # target d_in tile (auto from VMEM budget when None)
    compute_dtype=jnp.bfloat16,
):
    # Assumes expert_offsets[-1] == nk and offsets are consistent with
    # sorted_expert_indices (the ScatterMoE contract).
    nk = sorted_expert_indices.shape[0]
    n_experts, d_in, d_out = weight.shape

    sei = sorted_expert_indices.astype(jnp.int32)
    ssi = sorted_scattered_indices.astype(jnp.int32)
    offsets = expert_offsets.astype(jnp.int32)
    arange_nk = jnp.arange(nk, dtype=jnp.int32)

    # source input row for each expert-sorted position
    in_rows = arange_nk if grouped_in else ssi // k

    # pad each expert's rows to a multiple of tm so every (tm, d_in) tile belongs
    # to exactly one expert (grouped-GEMM layout).
    counts = offsets - jnp.concatenate([jnp.zeros((1,), jnp.int32), offsets[:-1]])
    starts = offsets - counts
    blocks_per_expert = (counts + tm - 1) // tm
    blocks_cum = jnp.cumsum(blocks_per_expert).astype(jnp.int32)
    block_off = blocks_cum - blocks_per_expert

    nb = -(-nk // tm) + n_experts            # static worst-case number of row tiles
    nk_pad = nb * tm

    rank = arange_nk - starts[sei]
    padded_pos = tm * block_off[sei] + rank  # padded row of sorted position i

    # fused gather + pad + cast: one HBM pass over the activations; padding rows
    # point out of bounds and are zero-filled.
    src = jnp.full((nk_pad,), inputs.shape[0], jnp.int32).at[padded_pos].set(in_rows)
    x_pad = jnp.take(inputs, src, axis=0, mode="fill", fill_value=0).astype(compute_dtype)

    # scalar-prefetch data: per-row-tile expert id + number of real tiles
    block_expert = jnp.searchsorted(
        blocks_cum, jnp.arange(nb, dtype=jnp.int32), side="right")
    block_expert = jnp.clip(block_expert, 0, n_experts - 1).astype(jnp.int32)
    num_real = blocks_cum[-1:].astype(jnp.int32)          # shape (1,)

    out_rows = arange_nk if grouped_out else ssi

    gate_pad = None
    if gates is not None:
        g_sorted = gates.reshape(-1).astype(jnp.float32)[out_rows]
        gate_pad = jnp.zeros((nk_pad, 1), jnp.float32).at[padded_pos].set(
            g_sorted[:, None])

    # gated path: keep the kernel output in bf16 (combine below is f32 anyway)
    out_dtype = compute_dtype if gates is not None else inputs.dtype

    y_pad = _grouped_matmul(
        x_pad, weight, num_real, block_expert, gate_pad,
        tm=tm, tn_target=tn, tk_target=tk,
        compute_dtype=compute_dtype, out_dtype=out_dtype)

    # un-pad + un-sort as a single gather (out_rows is a permutation of [0, nk)).
    inv = jnp.zeros((nk,), jnp.int32).at[out_rows].set(arange_nk)
    y = y_pad[padded_pos[inv]]               # (nk, d_out) in requested output ordering

    if gates is None:
        return y

    n_tok, kk = gates.shape
    # rows are already gated in the kernel; combine = f32 sum over the k slots.
    return (
        y.reshape(n_tok, kk, d_out)
        .astype(jnp.float32)
        .sum(axis=1)
        .astype(inputs.dtype)
    )


# ------------------------------- reference ----------------------------------


def _reference(weight, inputs, k, sei, ssi, gates, grouped_in, grouped_out):
    nk = sei.shape[0]
    in_rows = jnp.arange(nk) if grouped_in else ssi // k
    xs = inputs[in_rows]
    ys = jnp.einsum("nd,ndo->no", xs, weight[sei])
    out_rows = jnp.arange(nk) if grouped_out else ssi
    y = jnp.zeros((nk, weight.shape[-1]), inputs.dtype).at[out_rows].set(ys)
    if gates is None:
        return y
    n_tok, kk = gates.shape
    return jnp.einsum("nk,nkd->nd", gates, y.reshape(n_tok, kk, -1))


# --------------------------------- main --------------------------------------


def _run_case(key, *, n_experts, d_in, d_out, n_tokens, k, gated, **overrides):
    k_w, k_x, k_e, k_g = jax.random.split(key, 4)
    weight = jax.random.normal(k_w, (n_experts, d_in, d_out), jnp.float32) / jnp.sqrt(d_in)
    inputs = jax.random.normal(k_x, (n_tokens, d_in), jnp.float32)

    expert_idxs = jax.random.randint(k_e, (n_tokens * k,), 0, n_experts, dtype=jnp.int32)
    ssi = jnp.argsort(expert_idxs).astype(jnp.int32)
    sei = expert_idxs[ssi]
    offsets = jnp.cumsum(jnp.bincount(expert_idxs, length=n_experts)).astype(jnp.int32)
    gates = (
        jax.nn.softmax(jax.random.normal(k_g, (n_tokens, k), jnp.float32), axis=-1)
        if gated else None
    )

    out = expert_linear_forward(
        weight, inputs, k=k,
        sorted_expert_indices=sei, sorted_scattered_indices=ssi,
        expert_offsets=offsets, gates=gates, **overrides)
    out = jax.block_until_ready(out)

    ref = _reference(weight, inputs, k, sei, ssi, gates, False, False)
    assert out.shape == ref.shape, (out.shape, ref.shape)
    o32 = out.astype(jnp.float32)
    r32 = ref.astype(jnp.float32)
    err = float(jnp.max(jnp.abs(o32 - r32)))
    assert jnp.allclose(o32, r32, atol=2e-2, rtol=2e-2), err


if __name__ == "__main__":
    key = jax.random.PRNGKey(0)
    k1, k2, k3 = jax.random.split(key, 3)

    # gated path (typical usage): output is [n_tokens, d_out]
    _run_case(k1, n_experts=4, d_in=128, d_out=128, n_tokens=16, k=2, gated=True)

    # ungated path: per-(token, slot) expert outputs [n_tokens*k, d_out]
    _run_case(k2, n_experts=4, d_in=128, d_out=128, n_tokens=16, k=2, gated=False)

    # exercise the d_out tiling (n_j > 1) and the K-accumulator path (n_k > 1)
    _run_case(k3, n_experts=4, d_in=256, d_out=256, n_tokens=16, k=2, gated=True,
              tn=128, tk=128)

    print("KERNEL_OK")
</pallas_src>

<mosaic_0001>
module attributes {stable_mosaic.version = 11 : i64} {
  func.func @_scatter2scatter_kernel(%arg0: i32, %arg1: i32, %arg2: i32, %arg3: memref<1xi32, #tpu.memory_space<smem>>, %arg4: memref<5xi32, #tpu.memory_space<smem>>, %arg5: memref<128x1xf32, #tpu.memory_space<vmem>>, %arg6: memref<128x128xbf16, #tpu.memory_space<vmem>>, %arg7: memref<1x128x128xf32, #tpu.memory_space<vmem>>, %arg8: memref<128x128xbf16, #tpu.memory_space<vmem>>, %arg9: memref<128x128xf32, #tpu.memory_space<vmem>>) attributes {dimension_semantics = [#tpu.dimension_semantics<parallel>, #tpu.dimension_semantics<arbitrary>, #tpu.dimension_semantics<arbitrary>], iteration_bounds = array<i64: 1, 5, 1>, scalar_prefetch = 2 : i64, scratch_operands = 1 : i64, tpu.core_type = #tpu.core_type<tc>, window_params = [{transform_indices = @transform_0, window_bounds = array<i64: 128, 1>}, {transform_indices = @transform_1, window_bounds = array<i64: 128, 128>}, {transform_indices = @transform_2, window_bounds = array<i64: 1, 128, 128>}, {transform_indices = @transform_3, window_bounds = array<i64: 128, 128>}]} {
    %c0 = arith.constant 0 : index
    %0 = memref.load %arg3[%c0] : memref<1xi32, #tpu.memory_space<smem>>
    %1 = arith.cmpi slt, %arg1, %0 : i32
    %c0_i32 = arith.constant 0 : i32
    %2 = arith.cmpi eq, %arg2, %c0_i32 : i32
    %3 = arith.andi %1, %2 : i1
    %4 = arith.extui %3 : i1 to i32
    %c0_i32_0 = arith.constant 0 : i32
    %5 = arith.cmpi ne, %4, %c0_i32_0 : i32
    scf.if %5 {
      %cst = arith.constant 0.000000e+00 : f32
      %12 = vector.broadcast %cst : f32 to vector<128x128xf32>
      %c0_4 = arith.constant 0 : index
      %c0_5 = arith.constant 0 : index
      %13 = vector.load %arg9[%c0_4, %c0_5] : memref<128x128xf32, #tpu.memory_space<vmem>>, vector<128x128xf32>
      tpu.vector_store %arg9[%c0_4, %c0_5], %12 {strides = array<i32>} : memref<128x128xf32, #tpu.memory_space<vmem>>, vector<128x128xf32>,
    } else {
    }
    %6 = arith.extui %1 : i1 to i32
    %c0_i32_1 = arith.constant 0 : i32
    %7 = arith.cmpi ne, %6, %c0_i32_1 : i32
    scf.if %7 {
      %c0_4 = arith.constant 0 : index
      %c0_5 = arith.constant 0 : index
      %12 = vector.load %arg6[%c0_4, %c0_5] : memref<128x128xbf16, #tpu.memory_space<vmem>>, vector<128x128xbf16>
      %c0_6 = arith.constant 0 : index
      %c0_7 = arith.constant 0 : index
      %c0_8 = arith.constant 0 : index
      %13 = vector.load %arg7[%c0_6, %c0_7, %c0_8] : memref<1x128x128xf32, #tpu.memory_space<vmem>>, vector<1x128x128xf32>
      %14 = vector.shape_cast %13 : vector<1x128x128xf32> to vector<128x128xf32>
      %15 = arith.truncf %14 : vector<128x128xf32> to vector<128x128xbf16>
      %c0_9 = arith.constant 0 : index
      %c0_10 = arith.constant 0 : index
      %16 = vector.load %arg9[%c0_9, %c0_10] : memref<128x128xf32, #tpu.memory_space<vmem>>, vector<128x128xf32>
      %cst = arith.constant dense<0.000000e+00> : vector<128x128xf32>
      %17 = tpu.matmul %12, %15, %cst {dimension_numbers = #tpu.dot_dimension_numbers<[1], [0], [0], [1], [0, 0, 1, 1], [], []>} : vector<128x128xbf16>, vector<128x128xbf16>, vector<128x128xf32> -> vector<128x128xf32>
      %18 = arith.addf %16, %17 : vector<128x128xf32>
      %c0_11 = arith.constant 0 : index
      %c0_12 = arith.constant 0 : index
      %19 = vector.load %arg9[%c0_11, %c0_12] : memref<128x128xf32, #tpu.memory_space<vmem>>, vector<128x128xf32>
      tpu.vector_store %arg9[%c0_11, %c0_12], %18 {strides = array<i32>} : memref<128x128xf32, #tpu.memory_space<vmem>>, vector<128x128xf32>,
    } else {
    }
    %c0_i32_2 = arith.constant 0 : i32
    %8 = arith.cmpi eq, %arg2, %c0_i32_2 : i32
    %9 = arith.andi %1, %8 : i1
    %10 = arith.extui %9 : i1 to i32
    %c0_i32_3 = arith.constant 0 : i32
    %11 = arith.cmpi ne, %10, %c0_i32_3 : i32
    scf.if %11 {
      %c0_4 = arith.constant 0 : index
      %c0_5 = arith.constant 0 : index
      %12 = vector.load %arg9[%c0_4, %c0_5] : memref<128x128xf32, #tpu.memory_space<vmem>>, vector<128x128xf32>
      %c0_6 = arith.constant 0 : index
      %c0_7 = arith.constant 0 : index
      %13 = vector.load %arg5[%c0_6, %c0_7] : memref<128x1xf32, #tpu.memory_space<vmem>>, vector<128x1xf32>
      %14 = vector.broadcast %13 : vector<128x1xf32> to vector<128x128xf32>
      %15 = arith.mulf %12, %14 : vector<128x128xf32>
      %16 = arith.truncf %15 : vector<128x128xf32> to vector<128x128xbf16>
      %c0_8 = arith.constant 0 : index
      %c0_9 = arith.constant 0 : index
      %17 = vector.load %arg8[%c0_8, %c0_9] : memref<128x128xbf16, #tpu.memory_space<vmem>>, vector<128x128xbf16>
      tpu.vector_store %arg8[%c0_8, %c0_9], %16 {strides = array<i32>} : memref<128x128xbf16, #tpu.memory_space<vmem>>, vector<128x128xbf16>,
    } else {
    }
    return
  }
  func.func @transform_0(%arg0: i32, %arg1: i32, %arg2: i32, %arg3: memref<1xi32, #tpu.memory_space<smem>>, %arg4: memref<5xi32, #tpu.memory_space<smem>>) -> (i32, i32) {
    %c0 = arith.constant 0 : index
    %0 = memref.load %arg3[%c0] : memref<1xi32, #tpu.memory_space<smem>>
    %1 = arith.cmpi slt, %arg1, %0 : i32
    %c0_0 = arith.constant 0 : index
    %2 = memref.load %arg3[%c0_0] : memref<1xi32, #tpu.memory_space<smem>>
    %c1_i32 = arith.constant 1 : i32
    %3 = arith.subi %2, %c1_i32 : i32
    %4 = arith.select %1, %arg1, %3 : i32
    %c0_i32 = arith.constant 0 : i32
    %c0_i32_1 = arith.constant 0 : i32
    return %4, %c0_i32 : i32, i32
  }
  func.func @transform_1(%arg0: i32, %arg1: i32, %arg2: i32, %arg3: memref<1xi32, #tpu.memory_space<smem>>, %arg4: memref<5xi32, #tpu.memory_space<smem>>) -> (i32, i32) {
    %c0 = arith.constant 0 : index
    %0 = memref.load %arg3[%c0] : memref<1xi32, #tpu.memory_space<smem>>
    %1 = arith.cmpi slt, %arg1, %0 : i32
    %c0_0 = arith.constant 0 : index
    %2 = memref.load %arg3[%c0_0] : memref<1xi32, #tpu.memory_space<smem>>
    %c1_i32 = arith.constant 1 : i32
    %3 = arith.subi %2, %c1_i32 : i32
    %4 = arith.select %1, %arg1, %3 : i32
    %c0_i32 = arith.constant 0 : i32
    %5 = arith.select %1, %arg2, %c0_i32 : i32
    %c0_i32_1 = arith.constant 0 : i32
    return %4, %5 : i32, i32
  }
  func.func @transform_2(%arg0: i32, %arg1: i32, %arg2: i32, %arg3: memref<1xi32, #tpu.memory_space<smem>>, %arg4: memref<5xi32, #tpu.memory_space<smem>>) -> (i32, i32, i32) {
    %c0 = arith.constant 0 : index
    %0 = memref.load %arg3[%c0] : memref<1xi32, #tpu.memory_space<smem>>
    %1 = arith.cmpi slt, %arg1, %0 : i32
    %c0_0 = arith.constant 0 : index
    %2 = memref.load %arg3[%c0_0] : memref<1xi32, #tpu.memory_space<smem>>
    %c1_i32 = arith.constant 1 : i32
    %3 = arith.subi %2, %c1_i32 : i32
    %4 = arith.select %1, %arg1, %3 : i32
    %5 = arith.index_cast %4 : i32 to index
    %6 = memref.load %arg4[%5] : memref<5xi32, #tpu.memory_space<smem>>
    %c0_i32 = arith.constant 0 : i32
    %7 = arith.select %1, %arg2, %c0_i32 : i32
    %c0_i32_1 = arith.constant 0 : i32
    return %6, %7, %arg0 : i32, i32, i32
  }
  func.func @transform_3(%arg0: i32, %arg1: i32, %arg2: i32, %arg3: memref<1xi32, #tpu.memory_space<smem>>, %arg4: memref<5xi32, #tpu.memory_space<smem>>) -> (i32, i32) {
    %c0 = arith.constant 0 : index
    %0 = memref.load %arg3[%c0] : memref<1xi32, #tpu.memory_space<smem>>
    %1 = arith.cmpi slt, %arg1, %0 : i32
    %c0_0 = arith.constant 0 : index
    %2 = memref.load %arg3[%c0_0] : memref<1xi32, #tpu.memory_space<smem>>
    %c1_i32 = arith.constant 1 : i32
    %3 = arith.subi %2, %c1_i32 : i32
    %4 = arith.select %1, %arg1, %3 : i32
    %c0_i32 = arith.constant 0 : i32
    return %4, %arg0 : i32, i32
  }
}

</mosaic_0001>

<bundles_post_ra>
// kernel: custom-call
= control target key start
LH: loop header
LB: loop body
LE: loop exit
PB: predicated region body
PF: predicated region fallthrough
CT: control target
= control target key end

     0   :  { %s6_s0 = inlined_call_operand.vmem [shape: u32[5], index: 0, kind: output, shape index: {}]  }

// kernel: expert_linear_forward.1
= control target key start
LH: loop header
LB: loop body
LE: loop exit
PB: predicated region body
PF: predicated region fallthrough
CT: control target
= control target key end

     0   :  { %s1421_s0 = inlined_call_operand.<no memory space> [shape: s32[1], index: 0, kind: input, shape index: {}]   ;;  %s1422_s1 = inlined_call_operand.vmem [shape: s32[5], index: 1, kind: input, shape index: {}]   ;;  %s1423_s2 = inlined_call_operand.vmem [shape: f32[640,1], index: 2, kind: input, shape index: {}]   ;;  %s1424_s3 = inlined_call_operand.vmem [shape: bf16[640,128], index: 3, kind: input, shape index: {}]   ;;  %s1425_s4 = inlined_call_operand.vmem [shape: f32[4,128,128], index: 4, kind: input, shape index: {}]   ;;  %s1426_s5 = inlined_call_operand.vmem [shape: bf16[640,128], index: 5, kind: output, shape index: {}]  }
   0x1   :  { %10 = sst [smem:[#allocation4]] %s1421_s0  ;;  %s11_s22 = sshll.u32 %s1422_s1, 4  ;;  %s12_s22 = int_to_ptr.vmem [resolvable:$true] %s11_s22 }
   0x2   :  { %s1230_s23 = scalar_lea.vmem %s12_s22, 16  ;;  %p1235_p1 = scmp.lt.s32.totalorder %s12_s22, %s12_s22 }
   0x3   :  { %p1231_p0 = scmp.ne.s32.totalorder %s12_s22, %s1230_s23  ;;  %p1236_p2 = scmp.lt.s32.totalorder %s1230_s23, %s1230_s23 }
   0x5   :  { %p1237_p3 = por %p1236_p2, %p1235_p1 }
   0x7   :  { %p1238_p4 = pnand %p1237_p3, %p1231_p0 }
   0x9   :  { %1241 = shalt.err (!%p1238_p4)  }
   0xa   :  { %s1268_s24 = smov [#allocation5]  }
   0xb   :  { %14 = dma.vmem_to_smem %s12_s22, 16, %s1268_s24, [#allocation3] }
   0xc   :  { %1254 = dma.done.wait [#allocation3], 16 }
   0xd   :  { %1255 = vsyncadd [#allocation3], 4294967280 }
   0xe   :  { %16 = sfence }
   0xf   :  { %s1307_s25 = smov 0   ;;  %s1309_s0 = smov 0  }
  0x10   :  { %s1311_s26 = smov 0  }
  0x11 LB: > { %s37_s1 = sadd.s32 1, %s1262_s0  ;;  %p1023_p5 = scmp.ge.s32.totalorder %s1266_s26, 1  ;;  %s1266_s26 = sphi %s1311_s26, %s22_s26   ;;  %s1262_s0 = sphi %s1309_s0, %s1428_s0   ;;  %s1258_s25 = sphi %s1307_s25, %s1427_s25  }
  0x12   : > { %p39_p6 = scmp.ge.s32.totalorder %s37_s1, 5  ;;  %p274_p7 = scmp.lt.s32.totalorder %s1266_s26, 6 }
  0x14   : > { %s1430_s1 = smov (%p39_p6, %s37_s1), 0  ;;  %p275_p8 = pnand %p1023_p5, %p274_p7 }
  0x15   : > { %s1327_s27 = sld [smem:[#allocation4]] (!%p275_p8) }
  0x16   : > { %278 = sbr.rel (%p275_p8) target bundleno = 470 (0x1d6), region = 32 }
  0x1b   : > { %p341_p9 = scmp.lt.s32.totalorder (!%p275_p8), %s1258_s25, %s1327_s27  ;;  %s1024_s28 = sadd.s32 (!%p275_p8), 4294967295, %s1327_s27 }
  0x1d   : > { %s343_s29 = scalar_select %p341_p9, %s1258_s25, %s1024_s28  ;;  %v1269_v0 = vmov (%p341_p9), 0.0  }
  0x1e   : > { %423 = vst [vmem:[#allocation2] sm:$0xff] (%p341_p9), %v1269_v0  ;;  %424 = vst [vmem:[#allocation2 + $0x8] sm:$0xff] (%p341_p9), %v1269_v0 }
  0x1f   : > { %s1025_s30 = sshll.u32 %s343_s29, 4  ;;  %s377_s6 = sld [smem:[#allocation5 + %s343_s29]]  ;;  %425 = vst [vmem:[#allocation2 + $0x10] sm:$0xff] (%p341_p9), %v1269_v0  ;;  %426 = vst [vmem:[#allocation2 + $0x18] sm:$0xff] (%p341_p9), %v1269_v0 }
  0x20   : > { %p345_p10 = scmp.lt.s32.totalorder %s1025_s30, 79  ;;  %427 = vst [vmem:[#allocation2 + $0x20] sm:$0xff] (%p341_p9), %v1269_v0  ;;  %428 = vst [vmem:[#allocation2 + $0x28] sm:$0xff] (%p341_p9), %v1269_v0 }
  0x21   : > { %429 = vst [vmem:[#allocation2 + $0x30] sm:$0xff] (%p341_p9), %v1269_v0  ;;  %430 = vst [vmem:[#allocation2 + $0x38] sm:$0xff] (%p341_p9), %v1269_v0 }
  0x22   : > { %s1432_s30 = smov (!%p345_p10, %s1025_s30), 79  ;;  %431 = vst [vmem:[#allocation2 + $0x40] sm:$0xff] (%p341_p9), %v1269_v0  ;;  %432 = vst [vmem:[#allocation2 + $0x48] sm:$0xff] (%p341_p9), %v1269_v0 }
  0x23   : > { %s1026_s7 = sshll.u32 %s1432_s30, 3  ;;  %s1029_s8 = sshll.u32 %s1432_s30, 2  ;;  %433 = vst [vmem:[#allocation2 + $0x50] sm:$0xff] (%p341_p9), %v1269_v0  ;;  %434 = vst [vmem:[#allocation2 + $0x58] sm:$0xff] (%p341_p9), %v1269_v0 }
  0x24   : > { %s1339_s11 = scalar_lea.vmem %s1423_s2, %s1026_s7  ;;  %s1344_s14 = scalar_lea.vmem %s1424_s3, %s1029_s8  ;;  %435 = vst [vmem:[#allocation2 + $0x60] sm:$0xff] (%p341_p9), %v1269_v0  ;;  %436 = vst [vmem:[#allocation2 + $0x68] sm:$0xff] (%p341_p9), %v1269_v0 }
  0x25   : > { %p380_p11 = scmp.lt.s32.totalorder %s377_s6, 3  ;;  %s1349_s17 = scalar_lea.vmem %s1426_s5, %s1029_s8  ;;  %437 = vst [vmem:[#allocation2 + $0x70] sm:$0xff] (%p341_p9), %v1269_v0  ;;  %438 = vst [vmem:[#allocation2 + $0x78] sm:$0xff] (%p341_p9), %v1269_v0 }
  0x26   : > { %422 = sbr.rel (!%p341_p9) target bundleno = 45 (0x2d), region = 36 }
  0x27   : > { %s1434_s6 = smov (!%p380_p11, %s377_s6), 3 }
  0x28   : > { %s1064_s18 = sshll.u32 %s1434_s6, 7 }
  0x29   : > { %s1354_s21 = scalar_lea.vmem %s1425_s4, %s1064_s18 }
  0x2d PF: > { %p1037_p12 = scmp.ge.s32.totalorder %s1258_s25, %s1327_s27 }
  0x2e   : > { %v458_v1 = vld [vmem:[%s1354_s21] sm:$0xff] (!%p1037_p12)  ;;  %v459_v2 = vld [vmem:[%s1354_s21 + $0x8] sm:$0xff] (!%p1037_p12)  ;;  %v460_v3 = vld [vmem:[%s1354_s21 + $0x10] sm:$0xff] (!%p1037_p12) }
  0x2f   : > { %441 = sbr.rel (%p1037_p12) target bundleno = 307 (0x133), region = 40  ;;  %v474_v4 = vpack.c.bf16 (!%p1037_p12), %v459_v2, %v458_v1  ;;  %v461_v5 = vld [vmem:[%s1354_s21 + $0x18] sm:$0xff] (!%p1037_p12)  ;;  %v462_v7 = vld [vmem:[%s1354_s21 + $0x20] sm:$0xff] (!%p1037_p12)  ;;  %v463_v8 = vld [vmem:[%s1354_s21 + $0x28] sm:$0xff] (!%p1037_p12) }
  0x30   : > { %v475_v6 = vpack.c.bf16 (!%p1037_p12), %v461_v5, %v460_v3  ;;  %v464_v9 = vld [vmem:[%s1354_s21 + $0x30] sm:$0xff] (!%p1037_p12)  ;;  %v476_v10 = vpack.c.bf16 (!%p1037_p12), %v463_v8, %v462_v7  ;;  %v465_v11 = vld [vmem:[%s1354_s21 + $0x38] sm:$0xff] (!%p1037_p12)  ;;  %v1220_v12 = vld [vmem:[%s1344_s14] sm:$0xff] (!%p1037_p12)  }
  0x31   : > { %1145 = vmatprep.subr.bf16.mxu0 (!%p1037_p12), %v474_v4  ;;  %1177 = vmatprep.subr.bf16.mxu1 (!%p1037_p12), %v474_v4  ;;  %v1221_v13 = vld [vmem:[%s1344_s14 + $0x20] sm:$0xff] (!%p1037_p12)   ;;  %v477_v14 = vpack.c.bf16 (!%p1037_p12), %v465_v11, %v464_v9  ;;  %v467_v16 = vld [vmem:[%s1354_s21 + $0x48] sm:$0xff] (!%p1037_p12)  ;;  %v468_v18 = vld [vmem:[%s1354_s21 + $0x50] sm:$0xff] (!%p1037_p12) }
  0x32   : > { %1146 = vmatpush3.bf16.msra.mxu0 (!%p1037_p12), %v474_v4  ;;  %1185 = vmatpush3.bf16.msra.mxu1 (!%p1037_p12), %v474_v4  ;;  %v466_v15 = vld [vmem:[%s1354_s21 + $0x40] sm:$0xff] (!%p1037_p12)  ;;  %v469_v19 = vld [vmem:[%s1354_s21 + $0x58] sm:$0xff] (!%p1037_p12)  ;;  %v471_v22 = vld [vmem:[%s1354_s21 + $0x68] sm:$0xff] (!%p1037_p12) }
  0x33   : > { %1147 = vmatprep.subr.bf16.mxu0 (!%p1037_p12), %v475_v6  ;;  %1178 = vmatprep.subr.bf16.mxu1 (!%p1037_p12), %v475_v6  ;;  %v478_v17 = vpack.c.bf16 (!%p1037_p12), %v467_v16, %v466_v15  ;;  %v479_v20 = vpack.c.bf16 (!%p1037_p12), %v469_v19, %v468_v18  ;;  %v470_v21 = vld [vmem:[%s1354_s21 + $0x60] sm:$0xff] (!%p1037_p12)  ;;  %v472_v24 = vld [vmem:[%s1354_s21 + $0x70] sm:$0xff] (!%p1037_p12)  ;;  %v473_v25 = vld [vmem:[%s1354_s21 + $0x78] sm:$0xff] (!%p1037_p12) }
  0x34   : > { %1161 = vmatprep.mubr.bf16.mxu0 (!%p1037_p12), %v1220_v12  ;;  %1169 = vmatprep.mubr.bf16.mxu1 (!%p1037_p12), %v1221_v13  ;;  %v480_v23 = vpack.c.bf16 (!%p1037_p12), %v471_v22, %v470_v21  ;;  %v481_v26 = vpack.c.bf16 (!%p1037_p12), %v473_v25, %v472_v24  ;;  %v1222_v27 = vld [vmem:[%s1344_s14 + $0x8] sm:$0xff] (!%p1037_p12)   ;;  %v1224_v29 = vld [vmem:[%s1344_s14 + $0x10] sm:$0xff] (!%p1037_p12)   ;;  %v1226_v31 = vld [vmem:[%s1344_s14 + $0x18] sm:$0xff] (!%p1037_p12)  }
  0x35   : > { %v1223_v28 = vld [vmem:[%s1344_s14 + $0x28] sm:$0xff] (!%p1037_p12)   ;;  %v1225_v30 = vld [vmem:[%s1344_s14 + $0x30] sm:$0xff] (!%p1037_p12)   ;;  %v1227_v32 = vld [vmem:[%s1344_s14 + $0x38] sm:$0xff] (!%p1037_p12)  }
  0x36   : > { %1148 = vmatpush3.bf16.msra.mxu0 %v475_v6  ;;  %1186 = vmatpush3.bf16.msra.mxu1 %v475_v6  ;;  %v484_v33 = vld [vmem:[#allocation2 + $0x10] sm:$0xff]  ;;  %v482_v35 = vld [vmem:[#allocation2] sm:$0xff]  ;;  %v485_v39 = vld [vmem:[#allocation2 + $0x18] sm:$0xff] }
  0x37   : > { %1149 = vmatprep.subr.bf16.mxu0 %v476_v10  ;;  %1179 = vmatprep.subr.bf16.mxu1 %v476_v10  ;;  %v492_v34 = vld [vmem:[#allocation2 + $0x50] sm:$0xff]  ;;  %v490_v36 = vld [vmem:[#allocation2 + $0x40] sm:$0xff]  ;;  %v493_v40 = vld [vmem:[#allocation2 + $0x58] sm:$0xff] }
  0x38   : > { %v483_v45 = vld [vmem:[#allocation2 + $0x8] sm:$0xff]  ;;  %v488_v57 = vld [vmem:[#allocation2 + $0x30] sm:$0xff]  ;;  %v486_v59 = vld [vmem:[#allocation2 + $0x20] sm:$0xff] }
  0x39   : > { %v491_v46 = vld [vmem:[#allocation2 + $0x48] sm:$0xff]  ;;  %v496_v58 = vld [vmem:[#allocation2 + $0x70] sm:$0xff]  ;;  %v494_v60 = vld [vmem:[#allocation2 + $0x60] sm:$0xff] }
  0x3a   : > { %1150 = vmatpush3.bf16.msra.mxu0 %v476_v10  ;;  %1187 = vmatpush3.bf16.msra.mxu1 %v476_v10  ;;  %v489_v63 = vld [vmem:[#allocation2 + $0x38] sm:$0xff]  ;;  %v487_v5 = vld [vmem:[#allocation2 + $0x28] sm:$0xff] }
  0x3b   : > { %1151 = vmatprep.subr.bf16.mxu0 %v477_v14  ;;  %1180 = vmatprep.subr.bf16.mxu1 %v477_v14  ;;  %v497_v0 = vld [vmem:[#allocation2 + $0x78] sm:$0xff]  ;;  %v495_v6 = vld [vmem:[#allocation2 + $0x68] sm:$0xff] }
  0x3e   : > { %1152 = vmatpush3.bf16.msra.mxu0 %v477_v14  ;;  %1188 = vmatpush3.bf16.msra.mxu1 %v477_v14 }
  0x3f   : > { %1153 = vmatprep.subr.bf16.mxu0 %v478_v17  ;;  %1181 = vmatprep.subr.bf16.mxu1 %v478_v17 }
  0x42   : > { %1154 = vmatpush3.bf16.msra.mxu0 %v478_v17  ;;  %1189 = vmatpush3.bf16.msra.mxu1 %v478_v17 }
  0x43   : > { %1155 = vmatprep.subr.bf16.mxu0 %v479_v20  ;;  %1182 = vmatprep.subr.bf16.mxu1 %v479_v20 }
  0x46   : > { %1156 = vmatpush3.bf16.msra.mxu0 %v479_v20  ;;  %1190 = vmatpush3.bf16.msra.mxu1 %v479_v20 }
  0x47   : > { %1157 = vmatprep.subr.bf16.mxu0 %v480_v23  ;;  %1183 = vmatprep.subr.bf16.mxu1 %v480_v23 }
  0x4a   : > { %1158 = vmatpush3.bf16.msra.mxu0 %v480_v23  ;;  %1191 = vmatpush3.bf16.msra.mxu1 %v480_v23 }
  0x4b   : > { %1159 = vmatprep.subr.bf16.mxu0 %v481_v26  ;;  %1184 = vmatprep.subr.bf16.mxu1 %v481_v26 }
  0x4e   : > { %1160 = vmatpush3.bf16.msra.mxu0 %v481_v26  ;;  %1192 = vmatpush3.bf16.msra.mxu1 %v481_v26 }
  0x51   : > { %1162 = vmatmul.mubr.bf16.vlgmr.msra.gmra.mrb[0].mxu0 %v1222_v27  ;;  %1170 = vmatmul.mubr.bf16.vlgmr.msra.gmra.mrb[0].mxu1 %v1223_v28 }
  0x52   : > { %1165 = vmatprep.mubr.bf16.mxu0 %v1224_v29  ;;  %1173 = vmatprep.mubr.bf16.mxu1 %v1225_v30 }
  0x59   : > { %1166 = vmatmul.mubr.bf16.gmra.mrb[4].mxu0 %v1226_v31  ;;  %1174 = vmatmul.mubr.bf16.gmra.mrb[4].mxu1 %v1227_v32 }
 0x124   : > { %v1163_v37 = vpop.f32.mrb[0].mxu0  ;;  %v1171_v38 = vpop.f32.mrb[0].mxu1 }
 0x125   : > { %v645_v41 = vadd.f32 %v1163_v37, %v484_v33  ;;  %v653_v42 = vadd.f32 %v1171_v38, %v492_v34  ;;  %v580_v43 = vpop.f32.mrb[1].mxu0  ;;  %v612_v44 = vpop.f32.mrb[1].mxu1 }
 0x126   : > { %v643_v47 = vadd.f32 %v580_v43, %v482_v35  ;;  %v651_v48 = vadd.f32 %v612_v44, %v490_v36  ;;  %v1164_v49 = vpop.f32.mrb[2].mxu0  ;;  %v1172_v50 = vpop.f32.mrb[2].mxu1 }
 0x127   : > { %661 = vst [vmem:[#allocation2 + $0x10] sm:$0xff] %v645_v41  ;;  %669 = vst [vmem:[#allocation2 + $0x50] sm:$0xff] %v653_v42  ;;  %v646_v51 = vadd.f32 %v1164_v49, %v485_v39  ;;  %v654_v52 = vadd.f32 %v1172_v50, %v493_v40  ;;  %v583_v53 = vpop.f32.mrb[3].mxu0  ;;  %v615_v54 = vpop.f32.mrb[3].mxu1 }
 0x128   : > { %659 = vst [vmem:[#allocation2] sm:$0xff] %v643_v47  ;;  %667 = vst [vmem:[#allocation2 + $0x40] sm:$0xff] %v651_v48  ;;  %v644_v55 = vadd.f32 %v583_v53, %v483_v45  ;;  %v652_v56 = vadd.f32 %v615_v54, %v491_v46 }
 0x129   : > { %662 = vst [vmem:[#allocation2 + $0x18] sm:$0xff] %v646_v51  ;;  %670 = vst [vmem:[#allocation2 + $0x58] sm:$0xff] %v654_v52 }
 0x12a   : > { %660 = vst [vmem:[#allocation2 + $0x8] sm:$0xff] %v644_v55  ;;  %668 = vst [vmem:[#allocation2 + $0x48] sm:$0xff] %v652_v56 }
 0x12c   : > { %v1167_v61 = vpop.f32.mrb[4].mxu0  ;;  %v1175_v62 = vpop.f32.mrb[4].mxu1 }
 0x12d   : > { %v649_v1 = vadd.f32 %v1167_v61, %v488_v57  ;;  %v657_v2 = vadd.f32 %v1175_v62, %v496_v58  ;;  %v596_v3 = vpop.f32.mrb[5].mxu0  ;;  %v628_v4 = vpop.f32.mrb[5].mxu1 }
 0x12e   : > { %v647_v7 = vadd.f32 %v596_v3, %v486_v59  ;;  %v655_v8 = vadd.f32 %v628_v4, %v494_v60  ;;  %v1168_v9 = vpop.f32.mrb[6].mxu0  ;;  %v1176_v10 = vpop.f32.mrb[6].mxu1 }
 0x12f   : > { %665 = vst [vmem:[#allocation2 + $0x30] sm:$0xff] %v649_v1  ;;  %673 = vst [vmem:[#allocation2 + $0x70] sm:$0xff] %v657_v2  ;;  %v650_v11 = vadd.f32 %v1168_v9, %v489_v63  ;;  %v658_v12 = vadd.f32 %v1176_v10, %v497_v0  ;;  %v599_v13 = vpop.f32.mrb[7].mxu0  ;;  %v631_v14 = vpop.f32.mrb[7].mxu1 }
 0x130   : > { %663 = vst [vmem:[#allocation2 + $0x20] sm:$0xff] %v647_v7  ;;  %671 = vst [vmem:[#allocation2 + $0x60] sm:$0xff] %v655_v8  ;;  %v648_v15 = vadd.f32 %v599_v13, %v487_v5  ;;  %v656_v16 = vadd.f32 %v631_v14, %v495_v6 }
 0x131   : > { %666 = vst [vmem:[#allocation2 + $0x38] sm:$0xff] %v650_v11  ;;  %674 = vst [vmem:[#allocation2 + $0x78] sm:$0xff] %v658_v12 }
 0x132   : > { %664 = vst [vmem:[#allocation2 + $0x28] sm:$0xff] %v648_v15  ;;  %672 = vst [vmem:[#allocation2 + $0x68] sm:$0xff] %v656_v16 }
 0x133 PF: > { %676 = sbr.rel (!%p341_p9) target bundleno = 470 (0x1d6), region = 44  ;;  %v695_v17 = vld [vmem:[%s1339_s11 + $0x10] sm:$0xff] (%p341_p9)  ;;  %v693_v18 = vld [vmem:[%s1339_s11] sm:$0xff] (%p341_p9)  ;;  %v1270_v19 = vmov (%p341_p9), 0   ;;  %v696_v20 = vld [vmem:[%s1339_s11 + $0x18] sm:$0xff] (%p341_p9) }
 0x134   : > { %1229 = vset.pattern.permute.xlu1 (%p341_p9), %v1270_v19  ;;  %1228 = vset.pattern.permute.xlu0 (%p341_p9), %v1270_v19  ;;  %v694_v21 = vld [vmem:[%s1339_s11 + $0x8] sm:$0xff] (%p341_p9)  ;;  %v697_v23 = vld [vmem:[%s1339_s11 + $0x20] sm:$0xff] (%p341_p9)  ;;  %v700_v24 = vld [vmem:[%s1339_s11 + $0x38] sm:$0xff] (%p341_p9) }
 0x135   : > { %721 = vperm.xlu1 (%p341_p9), %1229, %v695_v17   ;;  %711 = vperm.xlu0 (%p341_p9), %1228, %v693_v18   ;;  %v698_v22 = vld [vmem:[%s1339_s11 + $0x28] sm:$0xff] (%p341_p9)  ;;  %v699_v25 = vld [vmem:[%s1339_s11 + $0x30] sm:$0xff] (%p341_p9)  ;;  %v701_v27 = vld [vmem:[%s1339_s11 + $0x40] sm:$0xff] (%p341_p9) }
 0x136   : > { %v702_v26 = vld [vmem:[%s1339_s11 + $0x48] sm:$0xff] (%p341_p9)  ;;  %v704_v28 = vld [vmem:[%s1339_s11 + $0x58] sm:$0xff] (%p341_p9)  ;;  %v703_v29 = vld [vmem:[%s1339_s11 + $0x50] sm:$0xff] (%p341_p9) }
 0x137   : > { %v706_v30 = vld [vmem:[%s1339_s11 + $0x68] sm:$0xff] (%p341_p9)  ;;  %v705_v31 = vld [vmem:[%s1339_s11 + $0x60] sm:$0xff] (%p341_p9)  ;;  %v708_v32 = vld [vmem:[%s1339_s11 + $0x78] sm:$0xff] (%p341_p9) }
 0x138   : > { %v707_v33 = vld [vmem:[%s1339_s11 + $0x70] sm:$0xff] (%p341_p9)  ;;  %v677_v37 = vld [vmem:[#allocation2] sm:$0xff] (%p341_p9)  ;;  %v680_v38 = vld [vmem:[#allocation2 + $0x18] sm:$0xff] (%p341_p9) }
 0x139   : > { %726 = vperm.xlu1 (%p341_p9), %1229, %v696_v20   ;;  %716 = vperm.xlu0 (%p341_p9), %1228, %v694_v21   ;;  %v679_v36 = vld [vmem:[#allocation2 + $0x10] sm:$0xff] (%p341_p9)  ;;  %v678_v39 = vld [vmem:[#allocation2 + $0x8] sm:$0xff] (%p341_p9)  ;;  %v681_v47 = vld [vmem:[#allocation2 + $0x20] sm:$0xff] (%p341_p9) }
 0x13a   : > { %v682_v46 = vld [vmem:[#allocation2 + $0x28] sm:$0xff]  ;;  %v684_v54 = vld [vmem:[#allocation2 + $0x38] sm:$0xff]  ;;  %v683_v55 = vld [vmem:[#allocation2 + $0x30] sm:$0xff] }
 0x13b   : > { %v686_v61 = vld [vmem:[#allocation2 + $0x48] sm:$0xff]  ;;  %v685_v62 = vld [vmem:[#allocation2 + $0x40] sm:$0xff]  ;;  %v688_v4 = vld [vmem:[#allocation2 + $0x58] sm:$0xff] }
 0x13c   : > { %v687_v5 = vld [vmem:[#allocation2 + $0x50] sm:$0xff]  ;;  %v690_v11 = vld [vmem:[#allocation2 + $0x68] sm:$0xff]  ;;  %v689_v12 = vld [vmem:[#allocation2 + $0x60] sm:$0xff] }
 0x13d   : > { %736 = vperm.xlu1 %1229, %v698_v22   ;;  %731 = vperm.xlu0 %1228, %v697_v23   ;;  %v692_v18 = vld [vmem:[#allocation2 + $0x78] sm:$0xff]  ;;  %v691_v19 = vld [vmem:[#allocation2 + $0x70] sm:$0xff] }
 0x141   : > { %746 = vperm.xlu1 %1229, %v700_v24   ;;  %741 = vperm.xlu0 %1228, %v699_v25  }
 0x145   : > { %756 = vperm.xlu1 %1229, %v702_v26   ;;  %751 = vperm.xlu0 %1228, %v701_v27  }
 0x149   : > { %766 = vperm.xlu1 %1229, %v704_v28   ;;  %761 = vperm.xlu0 %1228, %v703_v29  }
 0x14d   : > { %776 = vperm.xlu1 %1229, %v706_v30   ;;  %771 = vperm.xlu0 %1228, %v705_v31  }
 0x151   : > { %786 = vperm.xlu1 %1229, %v708_v32   ;;  %781 = vperm.xlu0 %1228, %v707_v33  }
 0x1b4   : > { %v722_v34 = vpop.permute.xlu1 %721  ;;  %v712_v35 = vpop.permute.xlu0 %711 }
 0x1b5   : > { %v791_v42 = vmul.f32 %v722_v34, %v679_v36  ;;  %v789_v43 = vmul.f32 %v712_v35, %v677_v37 }
 0x1b8   : > { %v727_v40 = vpop.permute.xlu1 %726  ;;  %v717_v41 = vpop.permute.xlu0 %716 }
 0x1b9   : > { %v792_v44 = vmul.f32 %v727_v40, %v680_v38  ;;  %v790_v45 = vmul.f32 %v717_v41, %v678_v39 }
 0x1bb   : > { %v1090_v48 = vpack.c.bf16 %v792_v44, %v791_v42  ;;  %v1085_v49 = vpack.c.bf16 %v790_v45, %v789_v43 }
 0x1bc   : > { %v737_v50 = vpop.permute.xlu1 %736  ;;  %v732_v51 = vpop.permute.xlu0 %731 }
 0x1bd   : > { %1122 = vst [vmem:[%s1349_s17 + $0x8] sm:$0xff] %v1090_v48   ;;  %1086 = vst [vmem:[%s1349_s17] sm:$0xff] %v1085_v49   ;;  %v794_v52 = vmul.f32 %v737_v50, %v682_v46  ;;  %v793_v53 = vmul.f32 %v732_v51, %v681_v47 }
 0x1bf   : > { %v1095_v56 = vpack.c.bf16 %v794_v52, %v793_v53 }
 0x1c0   : > { %v747_v57 = vpop.permute.xlu1 %746  ;;  %v742_v58 = vpop.permute.xlu0 %741 }
 0x1c1   : > { %1123 = vst [vmem:[%s1349_s17 + $0x10] sm:$0xff] %v1095_v56   ;;  %v796_v59 = vmul.f32 %v747_v57, %v684_v54  ;;  %v795_v60 = vmul.f32 %v742_v58, %v683_v55 }
 0x1c3   : > { %v1100_v63 = vpack.c.bf16 %v796_v59, %v795_v60 }
 0x1c4   : > { %v757_v0 = vpop.permute.xlu1 %756  ;;  %v752_v1 = vpop.permute.xlu0 %751 }
 0x1c5   : > { %1124 = vst [vmem:[%s1349_s17 + $0x18] sm:$0xff] %v1100_v63   ;;  %v798_v2 = vmul.f32 %v757_v0, %v686_v61  ;;  %v797_v3 = vmul.f32 %v752_v1, %v685_v62 }
 0x1c7   : > { %v1105_v6 = vpack.c.bf16 %v798_v2, %v797_v3 }
 0x1c8   : > { %v767_v7 = vpop.permute.xlu1 %766  ;;  %v762_v8 = vpop.permute.xlu0 %761 }
 0x1c9   : > { %1125 = vst [vmem:[%s1349_s17 + $0x20] sm:$0xff] %v1105_v6   ;;  %v800_v9 = vmul.f32 %v767_v7, %v688_v4  ;;  %v799_v10 = vmul.f32 %v762_v8, %v687_v5 }
 0x1cb   : > { %v1110_v13 = vpack.c.bf16 %v800_v9, %v799_v10 }
 0x1cc   : > { %v777_v14 = vpop.permute.xlu1 %776  ;;  %v772_v15 = vpop.permute.xlu0 %771 }
 0x1cd   : > { %1126 = vst [vmem:[%s1349_s17 + $0x28] sm:$0xff] %v1110_v13   ;;  %v802_v16 = vmul.f32 %v777_v14, %v690_v11  ;;  %v801_v17 = vmul.f32 %v772_v15, %v689_v12 }
 0x1cf   : > { %v1115_v20 = vpack.c.bf16 %v802_v16, %v801_v17 }
 0x1d0   : > { %v787_v21 = vpop.permute.xlu1 %786  ;;  %v782_v22 = vpop.permute.xlu0 %781 }
 0x1d1   : > { %1127 = vst [vmem:[%s1349_s17 + $0x30] sm:$0xff] %v1115_v20   ;;  %v804_v23 = vmul.f32 %v787_v21, %v692_v18  ;;  %v803_v24 = vmul.f32 %v782_v22, %v691_v19 }
 0x1d3   : > { %v1120_v25 = vpack.c.bf16 %v804_v23, %v803_v24 }
 0x1d5   : > { %1128 = vst [vmem:[%s1349_s17 + $0x38] sm:$0xff] %v1120_v25  }
 0x1d6 PF: > { %s22_s26 = sadd.s32 1, %s1266_s26   ;;  %s1427_s25 = smov %s1262_s0 }
 0x1d7   : > { %p19_p13 = scmp.ge.s32.totalorder %s22_s26, 7   ;;  %s1428_s0 = smov %s1430_s1 }
 0x1d9   :  { %21 = sbr.rel (!%p19_p13) target bundleno = 17 (0x11), region = 80 }

</bundles_post_ra>
